<compile_context>
chip_gen: v7x
topology: tpu7x:2x2x1
jax: 0.10.0
libtpu: 0.0.40
codegen_flags: <defaults>
</compile_context>

<pallas_src>
import functools

import jax
import jax.numpy as jnp
from jax.experimental import pallas as pl
from jax.experimental.pallas import tpu as pltpu

BN_EPS = 1e-5
LANE = 128
SUBLANE = 16   # node-axis padding granule (covers f32 / bf16 sublane tiling)


def _round_up(n, m):
    return ((n + m - 1) // m) * m


def _pick_row_tile(np_):
    # Largest MXU-friendly row tile that divides the padded node count.
    for tm in (512, 256, 128, 64, 32, 16, 8):
        if tm <= np_ and np_ % tm == 0:
            return tm
    return np_


# ----------------------------- Pallas kernel ------------------------------- #

def fused_gnn_kernel(a_ref, x_ref, w_ref, b_ref, s_ref, wc_ref, bc_ref,
                     o_ref, h_ref, z_ref, *, num_layers, tm):
    """One (layer l, node-row-tile i) grid step of the fused PatientGNN forward.

    a_ref : (TM, Np)    f32  rows i*TM..(i+1)*TM of D^-1/2 (A+I) D^-1/2
    x_ref : (Np, Dp)    f32  node features (lane-padded), VMEM-resident
    w_ref : (1, Dp, Dp) f32  layer-l GCN weight (previous layer's BN scale folded in)
    b_ref : (1, 1, Dp)  f32  layer-l conv bias
    s_ref : (1, 1, Dp)  f32  layer-l folded BN shift (= shift_l / scale_l)
    wc_ref: (Dp, Dp)    f32  classifier weight (last layer's BN scale folded in)
    bc_ref: (1, Dp)     f32  classifier bias
    o_ref : (TM, Dp)    f32  logits rows for tile i (written on the last layer only)
    h_ref : (Np, Dp)    f32  scratch: full hidden state of the previous layer
    z_ref : (Np, Dp)    f32  scratch: Z = H_prev @ W_l for the current layer
    """
    l = pl.program_id(0)
    i = pl.program_id(1)

    @pl.when((l == 0) & (i == 0))
    def _init_hidden():
        h_ref[...] = x_ref[...]

    @pl.when(i == 0)
    def _layer_transform():
        # XW for ALL nodes, once per layer; the row tiles below only aggregate.
        z_ref[...] = jnp.dot(h_ref[...], w_ref[0],
                             preferred_element_type=jnp.float32)

    # GCNConv aggregation for this row tile + (bias, ReLU, folded-BN shift) epilogue.
    agg = jnp.dot(a_ref[...], z_ref[...], preferred_element_type=jnp.float32)
    h_tile = jnp.maximum(agg + b_ref[0], 0.0) + s_ref[0]
    # TODO(synk): dropout omitted — inference semantics (training=False → identity).

    row0 = pl.multiple_of(i * tm, tm)
    h_ref[pl.ds(row0, tm), :] = h_tile

    @pl.when(l == num_layers - 1)
    def _classifier():
        o_ref[...] = jnp.dot(h_tile, wc_ref[...],
                             preferred_element_type=jnp.float32) + bc_ref[...]


# --------------------------- One-time host packing ------------------------- #

def build_normalized_adjacency(edge_index, num_nodes):
    """Dense D^-1/2 (A + I) D^-1/2 matching PyG GCNConv gcn_norm (add_self_loops)."""
    src, dst = edge_index[0], edge_index[1]
    a = jnp.zeros((num_nodes, num_nodes), jnp.float32)
    a = a.at[dst, src].add(1.0)                           # messages flow src -> dst
    diag = jnp.diagonal(a)
    a = a + jnp.diag(jnp.where(diag > 0.0, 0.0, 1.0))     # add remaining self-loops
    deg = a.sum(axis=1)
    d_inv_sqrt = jnp.where(deg > 0.0, jax.lax.rsqrt(deg), 0.0)
    return d_inv_sqrt[:, None] * a * d_inv_sqrt[None, :]


def pack_graph(x, edge_index):
    """One-time: normalized adjacency + padded node features."""
    n, f = x.shape
    np_ = _round_up(max(n, SUBLANE), SUBLANE)             # node axis: sublane pad only
    dp = LANE                                             # feature axis: lane pad
    assert f <= dp, "feature dim > 128 needs a feature-tiled grid"
    a = build_normalized_adjacency(edge_index, n)
    a_pad = jnp.zeros((np_, np_), jnp.float32).at[:n, :n].set(a)
    x_pad = jnp.zeros((np_, dp), jnp.float32).at[:n, :f].set(x)
    return a_pad, x_pad


def pack_params(params):
    """One-time: fold eval-mode BN scale into the next layer's weight; stack layers."""
    dp = LANE
    w_list, b_list, s_list = [], [], []
    carry_scale = None      # BN scale of the previous layer (folded into this W)
    for (w, b), (gamma, beta, mean, var) in zip(params["convs"], params["bns"]):
        fin, fout = w.shape
        assert max(fin, fout) <= dp, "dims > 128 need a feature-tiled grid"
        w_eff = w if carry_scale is None else carry_scale[:, None] * w
        scale = gamma * jax.lax.rsqrt(var + BN_EPS)
        shift = (beta - mean * scale) / scale             # exact fold (gamma=1 > 0)
        w_list.append(jnp.zeros((dp, dp), jnp.float32).at[:fin, :fout].set(w_eff))
        b_list.append(jnp.zeros((1, dp), jnp.float32).at[0, :fout].set(b))
        s_list.append(jnp.zeros((1, dp), jnp.float32).at[0, :fout].set(shift))
        carry_scale = scale
    wc, bc = params["classifier"]
    hidden, nc = wc.shape
    wc_eff = carry_scale[:, None] * wc                    # fold last BN scale into Wc
    wc_pad = jnp.zeros((dp, dp), jnp.float32).at[:hidden, :nc].set(wc_eff)
    bc_pad = jnp.zeros((1, dp), jnp.float32).at[0, :nc].set(bc)
    return (jnp.stack(w_list),        # (L, Dp, Dp)
            jnp.stack(b_list),        # (L, 1, Dp)
            jnp.stack(s_list),        # (L, 1, Dp)
            wc_pad, bc_pad)


# ------------------------------ Fused forward ------------------------------ #

@functools.partial(jax.jit, static_argnames=("num_layers",))
def fused_forward(a_pad, x_pad, w_stack, b_stack, s_stack, wc_pad, bc_pad, *,
                  num_layers):
    np_, dp = x_pad.shape
    tm = _pick_row_tile(np_)
    grid = (num_layers, np_ // tm)

    # Explicit scoped-VMEM budget (defaults are only 16/32 MiB on v5e / v6e+v7x).
    f32 = 4
    vmem_bytes = f32 * (2 * tm * np_        # A row tile (double-buffered)
                        + 2 * np_ * dp      # X
                        + 2 * dp * dp       # W_l block
                        + 2 * dp * dp       # Wc
                        + 2 * tm * dp       # output tile
                        + 2 * np_ * dp      # H + Z scratch
                        + 8 * dp)           # bias / shift / bc
    vmem_limit = int(min(64 * 2**20, max(2 * vmem_bytes, 4 * 2**20)))

    flops = num_layers * (2 * np_ * dp * dp + 2 * np_ * np_ * dp) + 2 * np_ * dp * dp
    bytes_acc = f32 * (num_layers * np_ * np_ + np_ * dp
                       + num_layers * (dp * dp + 2 * dp)
                       + dp * dp + dp + np_ * dp)

    grid_spec = pltpu.PrefetchScalarGridSpec(
        num_scalar_prefetch=0,
        grid=grid,
        in_specs=[
            pl.BlockSpec((tm, np_), lambda l, i: (i, 0)),       # A: streamed row tiles
            pl.BlockSpec((np_, dp), lambda l, i: (0, 0)),       # X: resident
            pl.BlockSpec((1, dp, dp), lambda l, i: (l, 0, 0)),  # W_l
            pl.BlockSpec((1, 1, dp), lambda l, i: (l, 0, 0)),   # bias_l
            pl.BlockSpec((1, 1, dp), lambda l, i: (l, 0, 0)),   # shift'_l
            pl.BlockSpec((dp, dp), lambda l, i: (0, 0)),        # Wc
            pl.BlockSpec((1, dp), lambda l, i: (0, 0)),         # bc
        ],
        out_specs=pl.BlockSpec((tm, dp), lambda l, i: (i, 0)),
        scratch_shapes=[pltpu.VMEM((np_, dp), jnp.float32),     # H (all nodes)
                        pltpu.VMEM((np_, dp), jnp.float32)],    # Z = H @ W_l
    )

    # TODO(synk): the layer axis must stay "arbitrary" (the H scratch carries a
    # cross-row dependency between layers); making the row axis megacore-"parallel"
    # on v7x needs a per-layer kernel split (or cross-core barrier), not this scratch.
    return pl.pallas_call(
        functools.partial(fused_gnn_kernel, num_layers=num_layers, tm=tm),
        out_shape=jax.ShapeDtypeStruct((np_, dp), jnp.float32),
        grid_spec=grid_spec,
        compiler_params=pltpu.CompilerParams(
            dimension_semantics=("arbitrary", "arbitrary"),
            vmem_limit_bytes=vmem_limit),
        cost_estimate=pl.CostEstimate(flops=int(flops), transcendentals=0,
                                      bytes_accessed=int(bytes_acc)),
    )(a_pad, x_pad, w_stack, b_stack, s_stack, wc_pad, bc_pad)


def patient_gnn_forward(x, edge_index, params, *, num_classes):
    """One-shot convenience wrapper (for repeated calls, hoist pack_* as in main)."""
    n = x.shape[0]
    a_pad, x_pad = pack_graph(x, edge_index)
    packed = pack_params(params)
    out = fused_forward(a_pad, x_pad, *packed, num_layers=len(params["convs"]))
    return out[:n, :num_classes]


# --------------------------- Params / reference ---------------------------- #

def init_params(key, num_features, hidden_dim, num_layers, num_classes):
    params = {"convs": [], "bns": []}
    dims = [num_features] + [hidden_dim] * num_layers
    for i in range(num_layers):
        key, kw = jax.random.split(key)
        fan_in, fan_out = dims[i], dims[i + 1]
        scale = 1.0 / jnp.sqrt(jnp.float32(fan_in))
        w = jax.random.uniform(kw, (fan_in, fan_out), jnp.float32, -scale, scale)
        b = jnp.zeros((fan_out,), jnp.float32)
        params["convs"].append((w, b))
        gamma = jnp.ones((fan_out,), jnp.float32)     # eval-mode BatchNorm1d
        beta = jnp.zeros((fan_out,), jnp.float32)
        mean = jnp.zeros((fan_out,), jnp.float32)
        var = jnp.ones((fan_out,), jnp.float32)
        params["bns"].append((gamma, beta, mean, var))
    key, kc = jax.random.split(key)
    scale = 1.0 / jnp.sqrt(jnp.float32(hidden_dim))
    wc = jax.random.uniform(kc, (hidden_dim, num_classes), jnp.float32, -scale, scale)
    bc = jnp.zeros((num_classes,), jnp.float32)
    params["classifier"] = (wc, bc)
    return params


def reference_forward(x, a_norm, params):
    """Pure-JAX reference matching the PyTorch module in eval mode."""
    h = x
    for (w, b), (gamma, beta, mean, var) in zip(params["convs"], params["bns"]):
        c = a_norm @ (h @ w) + b
        r = jnp.maximum(c, 0.0)
        scale = gamma * jax.lax.rsqrt(var + BN_EPS)
        h = scale * r + (beta - mean * scale)
    wc, bc = params["classifier"]
    return h @ wc + bc


# -------------------------------- Main ------------------------------------- #

if __name__ == "__main__":
    NUM_NODES = 16
    NUM_FEATURES = 8
    HIDDEN_DIM = 32      # Config.GNN_HIDDEN_DIM
    NUM_LAYERS = 2       # Config.GNN_NUM_LAYERS
    NUM_CLASSES = 4      # Config.NUM_CLASSES

    key = jax.random.PRNGKey(0)
    key, kx = jax.random.split(key)
    x = jax.random.normal(kx, (NUM_NODES, NUM_FEATURES), jnp.float32)

    # Deterministic bidirectional ring graph: 2*N edges.
    idx = jnp.arange(NUM_NODES, dtype=jnp.int32)
    nxt = (idx + 1) % NUM_NODES
    edge_index = jnp.stack([jnp.concatenate([idx, nxt]),
                            jnp.concatenate([nxt, idx])], axis=0)  # [2, 2N]

    params = init_params(key, NUM_FEATURES, HIDDEN_DIM, NUM_LAYERS, NUM_CLASSES)

    # One-time packing (hoisted out of the hot path), then the jitted fused forward.
    a_pad, x_pad = pack_graph(x, edge_index)
    packed = pack_params(params)
    out = fused_forward(a_pad, x_pad, *packed, num_layers=NUM_LAYERS)
    jax.block_until_ready(out)

    logits = out[:NUM_NODES, :NUM_CLASSES]
    assert logits.shape == (NUM_NODES, NUM_CLASSES)
    assert bool(jnp.all(jnp.isfinite(logits)))

    ref = reference_forward(x, build_normalized_adjacency(edge_index, NUM_NODES),
                            params)
    assert bool(jnp.allclose(logits, ref, rtol=2e-2, atol=2e-2)), (
        f"max |diff| = {float(jnp.max(jnp.abs(logits - ref)))}")
    print("KERNEL_OK")
</pallas_src>

<mosaic_0001>
module attributes {stable_mosaic.version = 11 : i64} {
  func.func @fused_gnn_kernel(%arg0: i32, %arg1: i32, %arg2: memref<16x16xf32, #tpu.memory_space<vmem>>, %arg3: memref<16x128xf32, #tpu.memory_space<vmem>>, %arg4: memref<1x128x128xf32, #tpu.memory_space<vmem>>, %arg5: memref<1x1x128xf32, #tpu.memory_space<vmem>>, %arg6: memref<1x1x128xf32, #tpu.memory_space<vmem>>, %arg7: memref<128x128xf32, #tpu.memory_space<vmem>>, %arg8: memref<1x128xf32, #tpu.memory_space<vmem>>, %arg9: memref<16x128xf32, #tpu.memory_space<vmem>>, %arg10: memref<16x128xf32, #tpu.memory_space<vmem>>, %arg11: memref<16x128xf32, #tpu.memory_space<vmem>>) attributes {dimension_semantics = [#tpu.dimension_semantics<arbitrary>, #tpu.dimension_semantics<arbitrary>], iteration_bounds = array<i64: 2, 1>, scalar_prefetch = 0 : i64, scratch_operands = 2 : i64, tpu.core_type = #tpu.core_type<tc>, window_params = [{transform_indices = @transform_0, window_bounds = array<i64: 16, 16>}, {pipeline_mode = #tpu.pipeline_mode<synchronous>, transform_indices = @transform_1, window_bounds = array<i64: 16, 128>}, {transform_indices = @transform_2, window_bounds = array<i64: 1, 128, 128>}, {transform_indices = @transform_3, window_bounds = array<i64: 1, 1, 128>}, {transform_indices = @transform_4, window_bounds = array<i64: 1, 1, 128>}, {pipeline_mode = #tpu.pipeline_mode<synchronous>, transform_indices = @transform_5, window_bounds = array<i64: 128, 128>}, {pipeline_mode = #tpu.pipeline_mode<synchronous>, transform_indices = @transform_6, window_bounds = array<i64: 1, 128>}, {transform_indices = @transform_7, window_bounds = array<i64: 16, 128>}]} {
    %c0_i32 = arith.constant 0 : i32
    %0 = arith.cmpi eq, %arg0, %c0_i32 : i32
    %c0_i32_0 = arith.constant 0 : i32
    %1 = arith.cmpi eq, %arg1, %c0_i32_0 : i32
    %2 = arith.andi %0, %1 : i1
    %3 = arith.extui %2 : i1 to i32
    %c0_i32_1 = arith.constant 0 : i32
    %4 = arith.cmpi ne, %3, %c0_i32_1 : i32
    scf.if %4 {
      %c0_16 = arith.constant 0 : index
      %c0_17 = arith.constant 0 : index
      %28 = vector.load %arg3[%c0_16, %c0_17] : memref<16x128xf32, #tpu.memory_space<vmem>>, vector<16x128xf32>
      %c0_18 = arith.constant 0 : index
      %c0_19 = arith.constant 0 : index
      %29 = vector.load %arg10[%c0_18, %c0_19] : memref<16x128xf32, #tpu.memory_space<vmem>>, vector<16x128xf32>
      tpu.vector_store %arg10[%c0_18, %c0_19], %28 {strides = array<i32>} : memref<16x128xf32, #tpu.memory_space<vmem>>, vector<16x128xf32>,
    } else {
    }
    %c0_i32_2 = arith.constant 0 : i32
    %5 = arith.cmpi eq, %arg1, %c0_i32_2 : i32
    %6 = arith.extui %5 : i1 to i32
    %c0_i32_3 = arith.constant 0 : i32
    %7 = arith.cmpi ne, %6, %c0_i32_3 : i32
    scf.if %7 {
      %c0_16 = arith.constant 0 : index
      %c0_17 = arith.constant 0 : index
      %28 = vector.load %arg10[%c0_16, %c0_17] : memref<16x128xf32, #tpu.memory_space<vmem>>, vector<16x128xf32>
      %c0_18 = arith.constant 0 : index
      %c0_19 = arith.constant 0 : index
      %c0_20 = arith.constant 0 : index
      %29 = vector.load %arg4[%c0_18, %c0_19, %c0_20] : memref<1x128x128xf32, #tpu.memory_space<vmem>>, vector<1x128x128xf32>
      %30 = vector.shape_cast %29 : vector<1x128x128xf32> to vector<128x128xf32>
      %cst_21 = arith.constant dense<0.000000e+00> : vector<16x128xf32>
      %31 = tpu.matmul %28, %30, %cst_21 {dimension_numbers = #tpu.dot_dimension_numbers<[1], [0], [0], [1], [0, 0, 1, 1], [], []>} : vector<16x128xf32>, vector<128x128xf32>, vector<16x128xf32> -> vector<16x128xf32>
      %c0_22 = arith.constant 0 : index
      %c0_23 = arith.constant 0 : index
      %32 = vector.load %arg11[%c0_22, %c0_23] : memref<16x128xf32, #tpu.memory_space<vmem>>, vector<16x128xf32>
      tpu.vector_store %arg11[%c0_22, %c0_23], %31 {strides = array<i32>} : memref<16x128xf32, #tpu.memory_space<vmem>>, vector<16x128xf32>,
    } else {
    }
    %c0 = arith.constant 0 : index
    %c0_4 = arith.constant 0 : index
    %8 = vector.load %arg2[%c0, %c0_4] : memref<16x16xf32, #tpu.memory_space<vmem>>, vector<16x16xf32>
    %c0_5 = arith.constant 0 : index
    %c0_6 = arith.constant 0 : index
    %9 = vector.load %arg11[%c0_5, %c0_6] : memref<16x128xf32, #tpu.memory_space<vmem>>, vector<16x128xf32>
    %cst = arith.constant dense<0.000000e+00> : vector<16x128xf32>
    %10 = tpu.matmul %8, %9, %cst {dimension_numbers = #tpu.dot_dimension_numbers<[1], [0], [0], [1], [0, 0, 1, 1], [], []>} : vector<16x16xf32>, vector<16x128xf32>, vector<16x128xf32> -> vector<16x128xf32>
    %c0_7 = arith.constant 0 : index
    %c0_8 = arith.constant 0 : index
    %c0_9 = arith.constant 0 : index
    %11 = vector.load %arg5[%c0_7, %c0_8, %c0_9] : memref<1x1x128xf32, #tpu.memory_space<vmem>>, vector<1x1x128xf32>
    %12 = vector.shape_cast %11 : vector<1x1x128xf32> to vector<1x128xf32>
    %13 = vector.broadcast %12 : vector<1x128xf32> to vector<16x128xf32>
    %14 = arith.addf %10, %13 : vector<16x128xf32>
    %cst_10 = arith.constant 0.000000e+00 : f32
    %15 = vector.broadcast %cst_10 : f32 to vector<16x128xf32>
    %16 = arith.maximumf %14, %15 : vector<16x128xf32>
    %c0_11 = arith.constant 0 : index
    %c0_12 = arith.constant 0 : index
    %c0_13 = arith.constant 0 : index
    %17 = vector.load %arg6[%c0_11, %c0_12, %c0_13] : memref<1x1x128xf32, #tpu.memory_space<vmem>>, vector<1x1x128xf32>
    %18 = vector.shape_cast %17 : vector<1x1x128xf32> to vector<1x128xf32>
    %19 = vector.broadcast %18 : vector<1x128xf32> to vector<16x128xf32>
    %20 = arith.addf %16, %19 : vector<16x128xf32>
    %c16_i32 = arith.constant 16 : i32
    %21 = arith.muli %arg1, %c16_i32 : i32
    %22 = tpu.assume_multiple %21, 16 : i32
    %23 = arith.index_cast %22 : i32 to index
    %c0_14 = arith.constant 0 : index
    %24 = vector.load %arg10[%23, %c0_14] : memref<16x128xf32, #tpu.memory_space<vmem>>, vector<16x128xf32>
    tpu.vector_store %arg10[%23, %c0_14], %20 {strides = array<i32>} : memref<16x128xf32, #tpu.memory_space<vmem>>, vector<16x128xf32>,
    %c1_i32 = arith.constant 1 : i32
    %25 = arith.cmpi eq, %arg0, %c1_i32 : i32
    %26 = arith.extui %25 : i1 to i32
    %c0_i32_15 = arith.constant 0 : i32
    %27 = arith.cmpi ne, %26, %c0_i32_15 : i32
    scf.if %27 {
      %c0_16 = arith.constant 0 : index
      %c0_17 = arith.constant 0 : index
      %28 = vector.load %arg7[%c0_16, %c0_17] : memref<128x128xf32, #tpu.memory_space<vmem>>, vector<128x128xf32>
      %cst_18 = arith.constant dense<0.000000e+00> : vector<16x128xf32>
      %29 = tpu.matmul %20, %28, %cst_18 {dimension_numbers = #tpu.dot_dimension_numbers<[1], [0], [0], [1], [0, 0, 1, 1], [], []>} : vector<16x128xf32>, vector<128x128xf32>, vector<16x128xf32> -> vector<16x128xf32>
      %c0_19 = arith.constant 0 : index
      %c0_20 = arith.constant 0 : index
      %30 = vector.load %arg8[%c0_19, %c0_20] : memref<1x128xf32, #tpu.memory_space<vmem>>, vector<1x128xf32>
      %31 = vector.broadcast %30 : vector<1x128xf32> to vector<16x128xf32>
      %32 = arith.addf %29, %31 : vector<16x128xf32>
      %c0_21 = arith.constant 0 : index
      %c0_22 = arith.constant 0 : index
      %33 = vector.load %arg9[%c0_21, %c0_22] : memref<16x128xf32, #tpu.memory_space<vmem>>, vector<16x128xf32>
      tpu.vector_store %arg9[%c0_21, %c0_22], %32 {strides = array<i32>} : memref<16x128xf32, #tpu.memory_space<vmem>>, vector<16x128xf32>,
    } else {
    }
    return
  }
  func.func @transform_0(%arg0: i32, %arg1: i32) -> (i32, i32) {
    %c0_i32 = arith.constant 0 : i32
    %c0_i32_0 = arith.constant 0 : i32
    return %arg1, %c0_i32 : i32, i32
  }
  func.func @transform_1(%arg0: i32, %arg1: i32) -> (i32, i32) {
    %c0_i32 = arith.constant 0 : i32
    %c0_i32_0 = arith.constant 0 : i32
    %c0_i32_1 = arith.constant 0 : i32
    return %c0_i32, %c0_i32_0 : i32, i32
  }
  func.func @transform_2(%arg0: i32, %arg1: i32) -> (i32, i32, i32) {
    %c0_i32 = arith.constant 0 : i32
    %c0_i32_0 = arith.constant 0 : i32
    %c0_i32_1 = arith.constant 0 : i32
    return %arg0, %c0_i32, %c0_i32_0 : i32, i32, i32
  }
  func.func @transform_3(%arg0: i32, %arg1: i32) -> (i32, i32, i32) {
    %c0_i32 = arith.constant 0 : i32
    %c0_i32_0 = arith.constant 0 : i32
    %c0_i32_1 = arith.constant 0 : i32
    return %arg0, %c0_i32, %c0_i32_0 : i32, i32, i32
  }
  func.func @transform_4(%arg0: i32, %arg1: i32) -> (i32, i32, i32) {
    %c0_i32 = arith.constant 0 : i32
    %c0_i32_0 = arith.constant 0 : i32
    %c0_i32_1 = arith.constant 0 : i32
    return %arg0, %c0_i32, %c0_i32_0 : i32, i32, i32
  }
  func.func @transform_5(%arg0: i32, %arg1: i32) -> (i32, i32) {
    %c0_i32 = arith.constant 0 : i32
    %c0_i32_0 = arith.constant 0 : i32
    %c0_i32_1 = arith.constant 0 : i32
    return %c0_i32, %c0_i32_0 : i32, i32
  }
  func.func @transform_6(%arg0: i32, %arg1: i32) -> (i32, i32) {
    %c0_i32 = arith.constant 0 : i32
    %c0_i32_0 = arith.constant 0 : i32
    %c0_i32_1 = arith.constant 0 : i32
    return %c0_i32, %c0_i32_0 : i32, i32
  }
  func.func @transform_7(%arg0: i32, %arg1: i32) -> (i32, i32) {
    %c0_i32 = arith.constant 0 : i32
    %c0_i32_0 = arith.constant 0 : i32
    return %arg1, %c0_i32 : i32, i32
  }
}

</mosaic_0001>

<bundles_post_ra>
// kernel: fused_forward.1
= control target key start
LH: loop header
LB: loop body
LE: loop exit
PB: predicated region body
PF: predicated region fallthrough
CT: control target
= control target key end

     0   :  { %s1676_s0 = inlined_call_operand.hbm [shape: f32[16,16], index: 0, kind: input, shape index: {}]   ;;  %s1677_s1 = inlined_call_operand.hbm [shape: f32[16,128], index: 1, kind: input, shape index: {}]   ;;  %s1678_s2 = inlined_call_operand.hbm [shape: f32[2,128,128], index: 2, kind: input, shape index: {}]   ;;  %s1679_s3 = inlined_call_operand.vmem [shape: f32[2,1,128], index: 3, kind: input, shape index: {}]   ;;  %s1680_s4 = inlined_call_operand.vmem [shape: f32[2,1,128], index: 4, kind: input, shape index: {}]   ;;  %s1681_s5 = inlined_call_operand.hbm [shape: f32[128,128], index: 5, kind: input, shape index: {}]   ;;  %s1682_s6 = inlined_call_operand.vmem [shape: f32[1,128], index: 6, kind: input, shape index: {}]   ;;  %s1683_s7 = inlined_call_operand.hbm [shape: f32[16,128], index: 7, kind: output, shape index: {}]  }
   0x1   :  { %1689 = sst [smem:[#allocation17_spill]] %s1679_s3 }
   0x2   :  { %1690 = sst [smem:[#allocation18_spill]] %s1680_s4 }
   0x3   :  { %1691 = sst [smem:[#allocation19_spill]] %s1682_s6 }
   0x4   :  { %1692 = sst [smem:[#allocation20_spill]] %s1683_s7 }
   0x5   :  { %12 = vsyncpa [#allocation5], 0 }
   0x6   :  { %13 = vsyncpa [#allocation8], 0 }
   0x7   :  { %14 = vsyncpa [#allocation6], 0  ;;  %s1390_s24 = smov 0   ;;  %s1392_s25 = smov 0  }
   0x8   :  { %s1394_s26 = smov 0   ;;  %s1396_s27 = smov 0  }
   0x9   :  { %s1398_s28 = smov 0   ;;  %s1400_s29 = smov 0  }
   0xa LB: > { %s1419_s30 = sadd.s32 4294967295, %s1339_s29   ;;  %p93_p0 = scmp.ne.s32.totalorder %s1327_s26, %s1323_s25  ;;  %s1339_s29 = sphi %s1400_s29, %s20_s29   ;;  %s1335_s28 = sphi %s1398_s28, %s1717_s28   ;;  %s1331_s27 = sphi %s1396_s27, %s1716_s27   ;;  %s1327_s26 = sphi %s1394_s26, %s1715_s26   ;;  %s1323_s25 = sphi %s1392_s25, %s1714_s25   ;;  %s1319_s24 = sphi %s1390_s24, %s1713_s24  }
   0xb   : > { %p94_p1 = scmp.eq.s32.totalorder %s1339_s29, 0  ;;  %p99_p2 = scmp.ne.s32.totalorder %s1323_s25, %s1319_s24 }
   0xc   : > { %p1684_p3 = scmp.eq.s32.totalorder %s1419_s30, 0  ;;  %p825_p4 = scmp.ge.s32.totalorder %s1339_s29, 1 }
   0xd   : > { %p95_p5 = por %p94_p1, %p93_p0  ;;  %p230_p6 = scmp.lt.s32.totalorder %s1339_s29, 3 }
   0xe   : > { %p1430_p7 = por %p1684_p3, %p99_p2  ;;  %s1341_s10 = smov [#allocation4]  }
   0xf   : > { %p1434_p8 = pnand %p825_p4, %p230_p6  ;;  %s245_s11 = sshll.u32 %s1341_s10, 4  ;;  %s246_s11 = int_to_ptr.vmem [resolvable:$true] %s245_s11 }
  0x10   : > { %s1693_s8 = scalar_select %p1430_p7, 1, 0 }
  0x11   : > { %s1694_s9 = scalar_select %p1434_p8, 1, 0 }
  0x12   : > { %p1054_p9 = pneg %p1434_p8  ;;  %p1071_p11 = scmp.lt.s32.totalorder %s1339_s29, 2 }
  0x13   : > { %s1133_s16 = scalar_lea.hbm %s1676_s0, 256 }
  0x14   : > { %p1442_p10 = pnand %p1054_p9, %p1684_p3  ;;  %p1447_p12 = pnand %p1071_p11, %p95_p5 }
  0x15   : > { %p1134_p13 = scmp.ne.s32.totalorder %s1676_s0, %s1133_s16  ;;  %p1140_p4 = scmp.lt.u32.totalorder %s1133_s16, %s1676_s0 }
  0x16   : > { %s1696_s13 = scalar_select %p1447_p12, 1, 0 }
  0x17   : > { %p1459_p0 = pneg %p1442_p10 }
  0x19   : > { %p1136_p1 = pnand %p1459_p0, %p1134_p13 }
  0x1b   : > { %p1137_p2 = pneg %p1136_p1 }
  0x1d   : > { %p1142_p5 = pnand %p1140_p4, %p1137_p2 }
  0x1f   : > { %1145 = shalt.err (!%p1142_p5)
}
  0x20   : > { %s1146_s22 = scalar_lea.vmem %s246_s11, 256  ;;  %p1154_p3 = scmp.lt.s32.totalorder %s246_s11, %s246_s11 }
  0x21   : > { %p1147_p6 = scmp.ne.s32.totalorder %s246_s11, %s1146_s22  ;;  %p1155_p7 = scmp.lt.s32.totalorder %s1146_s22, %s1146_s22 }
  0x23   : > { %p1149_p9 = pnand %p1147_p6, %p1459_p0  ;;  %p1156_p8 = por %p1155_p7, %p1154_p3 }
  0x25   : > { %p1150_p11 = pneg %p1149_p9 }
  0x27   : > { %p1157_p12 = pnand %p1156_p8, %p1150_p11 }
  0x29   : > { %1160 = shalt.err (!%p1157_p12)
}
  0x2a   : > { %s1342_s23 = smov 128   ;;  %s1343_s24 = smov 8  }
  0x2b   : > { %1057 = dma.hbm_to_vmem [thread:$0]  (!%p1442_p10), %s1676_s0, 256, %s246_s11, [#allocation5], %s1342_s23, %s1342_s23, %s1343_s24  }
  0x2c   : > { %s1344_s15 = smov [#allocation7]   ;;  %s1345_s17 = smov [#allocation10]  }
  0x2d   : > { %s258_s16 = sshll.u32 %s1344_s15, 4  ;;  %s271_s18 = sshll.u32 %s1345_s17, 4  ;;  %s259_s16 = int_to_ptr.vmem [resolvable:$true] %s258_s16  ;;  %s272_s18 = int_to_ptr.vmem [resolvable:$true] %s271_s18 }
  0x2e   : > { %s1161_s22 = scalar_lea.hbm %s1677_s1, 256 }
  0x2f   : > { %p1162_p3 = scmp.ne.s32.totalorder %s1677_s1, %s1161_s22  ;;  %p1168_p12 = scmp.lt.u32.totalorder %s1161_s22, %s1677_s1 }
  0x31   : > { %p1164_p7 = pnand %p1162_p3, %p1459_p0 }
  0x33   : > { %p1165_p8 = pneg %p1164_p7 }
  0x35   : > { %p1170_p13 = pnand %p1168_p12, %p1165_p8 }
  0x37   : > { %1173 = shalt.err (!%p1170_p13)
}
  0x38   : > { %s1174_s11 = scalar_lea.vmem %s259_s16, 256  ;;  %p1182_p5 = scmp.lt.s32.totalorder %s259_s16, %s259_s16 }
  0x39   : > { %p1175_p1 = scmp.ne.s32.totalorder %s259_s16, %s1174_s11  ;;  %p1183_p6 = scmp.lt.s32.totalorder %s1174_s11, %s1174_s11 }
  0x3b   : > { %p1177_p2 = pnand %p1175_p1, %p1459_p0  ;;  %p1184_p9 = por %p1183_p6, %p1182_p5 }
  0x3d   : > { %p1178_p4 = pneg %p1177_p2 }
  0x3f   : > { %p1185_p11 = pnand %p1184_p9, %p1178_p4 }
  0x41   : > { %1188 = shalt.err (!%p1185_p11)
}
  0x42   : > { %1060 = dma.hbm_to_vmem [thread:$0]  (!%p1442_p10), %s1677_s1, 256, %s259_s16, [#allocation8], %s1342_s23, %s1342_s23, %s1343_s24  }
  0x43   : > { %s1189_s10 = scalar_lea.hbm %s1681_s5, 2048 }
  0x44   : > { %p1190_p3 = scmp.ne.s32.totalorder %s1681_s5, %s1189_s10  ;;  %p1196_p12 = scmp.lt.u32.totalorder %s1189_s10, %s1681_s5 }
  0x46   : > { %p1192_p7 = pnand %p1190_p3, %p1459_p0 }
  0x48   : > { %p1193_p8 = pneg %p1192_p7 }
  0x4a   : > { %p1198_p13 = pnand %p1196_p12, %p1193_p8 }
  0x4c   : > { %1201 = shalt.err (!%p1198_p13)
}
  0x4d   : > { %s1202_s21 = scalar_lea.vmem %s272_s18, 2048  ;;  %p1210_p5 = scmp.lt.s32.totalorder %s272_s18, %s272_s18 }
  0x4e   : > { %p1203_p1 = scmp.ne.s32.totalorder %s272_s18, %s1202_s21  ;;  %p1211_p6 = scmp.lt.s32.totalorder %s1202_s21, %s1202_s21 }
  0x50   : > { %p1205_p2 = pnand %p1203_p1, %p1459_p0  ;;  %p1212_p9 = por %p1211_p6, %p1210_p5 }
  0x52   : > { %p1206_p4 = pneg %p1205_p2 }
  0x54   : > { %p1213_p11 = pnand %p1212_p9, %p1206_p4 }
  0x56   : > { %1216 = shalt.err (!%p1213_p11)
}
  0x57   : > { %1063 = dma.hbm_to_vmem [thread:$0]  (!%p1442_p10), %s1681_s5, 2048, %s272_s18, [#allocation8], %s1342_s23, %s1342_s23, %s1343_s24  }
  0x58   : > { %s86_s19 = sadd.s32 1, %s1327_s26  ;;  %s32_s11 = sadd.s32 1, %s1335_s28 }
  0x59   : > { %s288_s3 = sand.u32 1, %s1339_s29   ;;  %p34_p0 = scmp.ge.s32.totalorder %s32_s11, 2 }
  0x5a   : > { %s290_s12 = sand.u32 1, %s1327_s26   ;;  %s849_s4 = sshll.u32 %s1335_s28, 11 }
  0x5b   : > { %s1719_s11 = smov (%p34_p0, %s32_s11), 0  ;;  %s830_s6 = sshll.u32 %s290_s12, 7 }
  0x5c   : > { %s1530_s14 = scalar_lea.hbm %s1678_s2, %s849_s4  ;;  %s83_s18 = ssub.s32 %s1335_s28, %s1719_s11 }
  0x5d   : > { %p84_p10 = scmp.eq.s32.totalorder %s83_s18, 0  ;;  %s292_s15 = scalar_lea.vmem [#allocation9], %s830_s6 }
  0x5e   : > { %s299_s17 = sshll.u32 %s292_s15, 4  ;;  %s1539_s21 = scalar_lea.sflag [#allocation5], %s288_s3  ;;  %s1534_s17 = int_to_ptr.vmem [resolvable:$true] %s299_s17 }
  0x5f   : > { %s1537_s20 = scalar_select %p84_p10, %s1327_s26, %s86_s19  }
  0x60   : > { %s1217_s16 = scalar_lea.hbm %s1530_s14, 2048  ;;  %p1698_p7 = scmp.ne.s32.totalorder %s1696_s13, 0 }
  0x61   : > { %p1218_p3 = scmp.ne.s32.totalorder %s1530_s14, %s1217_s16  ;;  %s1222_s4 = scalar_lea.hbm %s1678_s2, 4096 }
  0x62   : > { %p1219_p8 = pneg %p1698_p7  ;;  %p1223_p1 = scmp.lt.u32.totalorder %s1530_s14, %s1678_s2 }
  0x63   : > { %p1224_p2 = scmp.lt.u32.totalorder %s1222_s4, %s1217_s16  ;;  %p1226_p5 = scmp.lt.u32.totalorder %s1217_s16, %s1530_s14 }
  0x64   : > { %p1220_p12 = pnand %p1219_p8, %p1218_p3 }
  0x65   : > { %p1225_p4 = por %p1224_p2, %p1223_p1 }
  0x66   : > { %p1221_p13 = pneg %p1220_p12 }
  0x67   : > { %p1227_p6 = por %p1226_p5, %p1225_p4 }
  0x69   : > { %p1228_p9 = pnand %p1227_p6, %p1221_p13 }
  0x6b   : > { %1231 = shalt.err (!%p1228_p9)
}
  0x6c   : > { %s1232_s19 = scalar_lea.vmem %s1534_s17, 2048  ;;  %s1346_s3 = smov [#allocation9]  }
  0x6d   : > { %p1233_p11 = scmp.ne.s32.totalorder %s1534_s17, %s1232_s19  ;;  %s1237_s10 = sshll.u32 %s1346_s3, 4  ;;  %s1238_s10 = int_to_ptr.vmem [resolvable:$false] %s1237_s10 }
  0x6e   : > { %s1239_s18 = scalar_lea.vmem %s1238_s10, 4096  ;;  %p1240_p3 = scmp.lt.s32.totalorder %s1534_s17, %s1238_s10 }
  0x6f   : > { %p1235_p0 = pnand %p1233_p11, %p1219_p8  ;;  %p1241_p12 = scmp.lt.s32.totalorder %s1239_s18, %s1232_s19 }
  0x71   : > { %p1236_p10 = pneg %p1235_p0  ;;  %p1242_p1 = por %p1241_p12, %p1240_p3 }
  0x73   : > { %p1243_p2 = pnand %p1242_p1, %p1236_p10 }
  0x75   : > { %1246 = shalt.err (!%p1243_p2)
}
  0x76   : > { %1067 = dma.hbm_to_vmem [thread:$0]  (!%p1698_p7), %s1530_s14, 2048, %s1534_s17, %s1539_s21, %s1342_s23, %s1342_s23, %s1343_s24  }
  0x77   : > { %p1699_p8 = scmp.ne.s32.totalorder %s1694_s9, 0 }
  0x78   : > { %p1700_p13 = scmp.eq.s32.totalorder (!%p1699_p8), %s1419_s30, 0 }
  0x79   : > { %323 = sbr.rel (%p1699_p8) target bundleno = 873 (0x369), region = 48 }
  0x80   : > { %1298 = dma.done.wait (%p1700_p13), [#allocation5], 256   ;;  %p1701_p4 = pmov %p1700_p13 }
  0x82   : > { %1300 = vsyncadd (%p1701_p4), [#allocation5], 4294967040  ;;  %p1702_p5 = pmov %p1701_p4 }
  0x83   : > { %p1703_p6 = pmov %p1701_p4 }
  0x84   : > { %1302 = dma.done.wait (%p1702_p5), [#allocation8], 256  }
  0x85   : > { %1304 = vsyncadd (%p1703_p6), [#allocation8], 4294967040  ;;  %s333_s13 = sand.u32 1, %s1419_s30   ;;  %s335_s23 = sand.u32 1, %s1323_s25  }
  0x86   : > { %s836_s24 = sshll.u32 %s335_s23, 7  ;;  %s334_s9 = scalar_lea.sflag [#allocation5], %s333_s13 }
  0x87   : > { %s1582_s14 = scalar_lea.vmem [#allocation9], %s836_s24  ;;  %p1704_p7 = scmp.ne.s32.totalorder %s1693_s8, 0 }
  0x89   : > { %1306 = dma.done.wait (%p1704_p7), %s334_s9, 2048  }
  0x8a   : > { %1308 = vsyncadd (%p1704_p7), %s334_s9, 4294965248  ;;  %p1705_p9 = pmov %p1701_p4 }
  0x8b   : > { %p1706_p11 = pmov %p1701_p4 }
  0x8c   : > { %1310 = dma.done.wait (%p1705_p9), [#allocation8], 2048  }
  0x8d   : > { %1312 = vsyncadd (%p1706_p11), [#allocation8], 4294965248  ;;  %p374_p0 = scmp.lt.s32.totalorder %s1331_s27, 1  ;;  %p381_p10 = scmp.eq.s32.totalorder %s1331_s27, 0 }
  0x8e   : > { %s1707_s16 = sld [smem:[#allocation17_spill]]  ;;  %s1708_s4 = sld [smem:[#allocation18_spill]]  ;;  %v387_v0 = vld [vmem:[#allocation7] sm:$0xff] (%p381_p10)  ;;  %v388_v1 = vld [vmem:[#allocation7 + $0x8] sm:$0xff] (%p381_p10) }
  0x8f   : > { %s1595_s15 = scalar_select %p374_p0, %s1331_s27, 1 }
  0x90   : > { %386 = sbr.rel (!%p381_p10) target bundleno = 151 (0x97), region = 68  ;;  %389 = vst [vmem:[#allocation2] sm:$0xff] (%p381_p10), %v387_v0  ;;  %390 = vst [vmem:[#allocation2 + $0x8] sm:$0xff] (%p381_p10), %v388_v1 }
  0x94   : > { %s376_s8 = scalar_lea.vmem %s1707_s16, %s1595_s15  ;;  %s379_s6 = scalar_lea.vmem %s1708_s4, %s1595_s15 }
  0x97 PF: > { %v396_v2 = vld [vmem:[%s1582_s14] sm:$0xff]  ;;  %v397_v3 = vld [vmem:[%s1582_s14 + $0x8] sm:$0xff]  ;;  %v398_v4 = vld [vmem:[%s1582_s14 + $0x10] sm:$0xff]  ;;  %vm500_vm0 = vcmask 130048   ;;  %p843_p3 = scmp.ne.s32.totalorder %s1331_s27, 1 }
  0x98   : > { %v968_v5 = vpack.c.bf16 %v397_v3, %v396_v2  ;;  %v399_v6 = vld [vmem:[%s1582_s14 + $0x18] sm:$0xff]  ;;  %v400_v8 = vld [vmem:[%s1582_s14 + $0x20] sm:$0xff]  ;;  %v401_v9 = vld [vmem:[%s1582_s14 + $0x28] sm:$0xff]  ;;  %s1711_s24 = sld [smem:[#allocation19_spill]] (!%p843_p3) }
  0x99   : > { %v972_v7 = vpack.c.bf16 %v399_v6, %v398_v4  ;;  %v976_v10 = vpack.c.bf16 %v401_v9, %v400_v8  ;;  %v394_v11 = vld [vmem:[#allocation2] sm:$0xff]  ;;  %v403_v13 = vld [vmem:[%s1582_s14 + $0x38] sm:$0xff]  ;;  %v404_v15 = vld [vmem:[%s1582_s14 + $0x40] sm:$0xff] }
  0x9a   : > { %969 = vmatprep.subr.bf16.mxu0 %v968_v5  ;;  %v402_v12 = vld [vmem:[%s1582_s14 + $0x30] sm:$0xff]  ;;  %923 = vmatprep.mubr.f32.mxu0 %v394_v11  ;;  %v405_v16 = vld [vmem:[%s1582_s14 + $0x48] sm:$0xff]  ;;  %v407_v19 = vld [vmem:[%s1582_s14 + $0x58] sm:$0xff] }
  0x9b   : > { %971 = vmatpush3.bf16.msra.mxu0 %v968_v5  ;;  %v980_v14 = vpack.c.bf16 %v403_v13, %v402_v12  ;;  %v984_v17 = vpack.c.bf16 %v405_v16, %v404_v15  ;;  %v406_v18 = vld [vmem:[%s1582_s14 + $0x50] sm:$0xff]  ;;  %v408_v21 = vld [vmem:[%s1582_s14 + $0x60] sm:$0xff]  ;;  %v409_v22 = vld [vmem:[%s1582_s14 + $0x68] sm:$0xff] }
  0x9c   : > { %973 = vmatprep.subr.bf16.mxu0 %v972_v7  ;;  %v988_v20 = vpack.c.bf16 %v407_v19, %v406_v18  ;;  %v992_v23 = vpack.c.bf16 %v409_v22, %v408_v21  ;;  %v410_v24 = vld [vmem:[%s1582_s14 + $0x70] sm:$0xff]  ;;  %v411_v25 = vld [vmem:[%s1582_s14 + $0x78] sm:$0xff]  ;;  %v489_v28 = vld [vmem:[#allocation4] sm:$0xff] }
  0x9d   : > { %v996_v26 = vpack.c.bf16 %v411_v25, %v410_v24  ;;  %v395_v27 = vld [vmem:[#allocation2 + $0x8] sm:$0xff]  ;;  %930 = vmatprep.mubr.msk.f32.mxu1 %vm500_vm0, %v489_v28  ;;  %v490_v32 = vld [vmem:[#allocation4 + $0x8] sm:$0xff]  ;;  %v839_v33 = vld [vmem:[%s376_s8] ss:$0 sm:$0xff] }
  0x9e   : > { %v842_v37 = vld [vmem:[%s379_s6] ss:$0 sm:$0xff]  ;;  %v601_v43 = vld [vmem:[#allocation10] sm:$0xff] (!%p843_p3)  ;;  %v602_v44 = vld [vmem:[#allocation10 + $0x8] sm:$0xff] (!%p843_p3) }
  0x9f   : > { %975 = vmatpush3.bf16.msra.mxu0 %v972_v7  ;;  %v603_v45 = vld [vmem:[#allocation10 + $0x10] sm:$0xff] (!%p843_p3)  ;;  %v1004_v46 = vpack.c.bf16 (!%p843_p3), %v602_v44, %v601_v43  ;;  %v604_v47 = vld [vmem:[#allocation10 + $0x18] sm:$0xff] (!%p843_p3)  ;;  %v605_v49 = vld [vmem:[#allocation10 + $0x20] sm:$0xff] (!%p843_p3) }
  0xa0   : > { %977 = vmatprep.subr.bf16.mxu0 %v976_v10  ;;  %v1008_v48 = vpack.c.bf16 (!%p843_p3), %v604_v47, %v603_v45  ;;  %v606_v50 = vld [vmem:[#allocation10 + $0x28] sm:$0xff] (!%p843_p3)  ;;  %v607_v52 = vld [vmem:[#allocation10 + $0x30] sm:$0xff] (!%p843_p3)  ;;  %v608_v53 = vld [vmem:[#allocation10 + $0x38] sm:$0xff] (!%p843_p3) }
  0xa1   : > { %v1012_v51 = vpack.c.bf16 (!%p843_p3), %v606_v50, %v605_v49  ;;  %v1016_v54 = vpack.c.bf16 (!%p843_p3), %v608_v53, %v607_v52  ;;  %v609_v55 = vld [vmem:[#allocation10 + $0x40] sm:$0xff] (!%p843_p3)  ;;  %v610_v56 = vld [vmem:[#allocation10 + $0x48] sm:$0xff] (!%p843_p3)  ;;  %v611_v58 = vld [vmem:[#allocation10 + $0x50] sm:$0xff] (!%p843_p3) }
  0xa2   : > { %v1020_v57 = vpack.c.bf16 (!%p843_p3), %v610_v56, %v609_v55  ;;  %v612_v59 = vld [vmem:[#allocation10 + $0x58] sm:$0xff] (!%p843_p3)  ;;  %v613_v61 = vld [vmem:[#allocation10 + $0x60] sm:$0xff] (!%p843_p3)  ;;  %v614_v62 = vld [vmem:[#allocation10 + $0x68] sm:$0xff] (!%p843_p3) }
  0xa3   : > { %979 = vmatpush3.bf16.msra.mxu0 %v976_v10  ;;  %v1024_v60 = vpack.c.bf16 (!%p843_p3), %v612_v59, %v611_v58  ;;  %v1028_v63 = vpack.c.bf16 (!%p843_p3), %v614_v62, %v613_v61  ;;  %v615_v0 = vld [vmem:[#allocation10 + $0x70] sm:$0xff] (!%p843_p3)  ;;  %v616_v1 = vld [vmem:[#allocation10 + $0x78] sm:$0xff] (!%p843_p3) }
  0xa4   : > { %981 = vmatprep.subr.bf16.mxu0 %v980_v14  ;;  %v1032_v2 = vpack.c.bf16 (!%p843_p3), %v616_v1, %v615_v0  ;;  %v844_v3 = vld [vmem:[%s1711_s24] ss:$0 sm:$0xff] (!%p843_p3) }
  0xa7   : > { %983 = vmatpush3.bf16.msra.mxu0 %v980_v14 }
  0xa8   : > { %985 = vmatprep.subr.bf16.mxu0 %v984_v17 }
  0xab   : > { %987 = vmatpush3.bf16.msra.mxu0 %v984_v17 }
  0xac   : > { %989 = vmatprep.subr.bf16.mxu0 %v988_v20 }
  0xaf   : > { %991 = vmatpush3.bf16.msra.mxu0 %v988_v20 }
  0xb0   : > { %993 = vmatprep.subr.bf16.mxu0 %v992_v23 }
  0xb3   : > { %995 = vmatpush3.bf16.msra.mxu0 %v992_v23 }
  0xb4   : > { %997 = vmatprep.subr.bf16.mxu0 %v996_v26 }
  0xb7   : > { %999 = vmatpush3.bf16.msra.mxu0 %v996_v26 }
  0xb8   : > { %1005 = vmatprep.subr.bf16.mxu0 (!%p843_p3), %v1004_v46 }
  0xba   : > { %924 = vmatmul.mubr.f32.vlgmr.msra.gmra.mrb[0].mxu0 %v395_v27 }
  0xbb   : > { %1007 = vmatpush3.bf16.msra.mxu0 (!%p843_p3), %v1004_v46 }
  0xbc   : > { %1009 = vmatprep.subr.bf16.mxu0 (!%p843_p3), %v1008_v48 }
  0xbf   : > { %1011 = vmatpush3.bf16.msra.mxu0 (!%p843_p3), %v1008_v48 }
  0xc0   : > { %1013 = vmatprep.subr.bf16.mxu0 (!%p843_p3), %v1012_v51 }
  0xc3   : > { %1015 = vmatpush3.bf16.msra.mxu0 (!%p843_p3), %v1012_v51 }
  0xc4   : > { %1017 = vmatprep.subr.bf16.mxu0 (!%p843_p3), %v1016_v54 }
  0xc7   : > { %1019 = vmatpush3.bf16.msra.mxu0 (!%p843_p3), %v1016_v54 }
  0xc8   : > { %1021 = vmatprep.subr.bf16.mxu0 (!%p843_p3), %v1020_v57 }
  0xcb   : > { %1023 = vmatpush3.bf16.msra.mxu0 (!%p843_p3), %v1020_v57 }
  0xcc   : > { %1025 = vmatprep.subr.bf16.mxu0 (!%p843_p3), %v1024_v60 }
  0xcf   : > { %1027 = vmatpush3.bf16.msra.mxu0 (!%p843_p3), %v1024_v60 }
  0xd0   : > { %1029 = vmatprep.subr.bf16.mxu0 (!%p843_p3), %v1028_v63 }
  0xd3   : > { %1031 = vmatpush3.bf16.msra.mxu0 (!%p843_p3), %v1028_v63 }
  0xd4   : > { %1033 = vmatprep.subr.bf16.mxu0 (!%p843_p3), %v1032_v2 }
  0xd7   : > { %1035 = vmatpush3.bf16.msra.mxu0 (!%p843_p3), %v1032_v2 }
 0x18d   : > { %v925_v29 = vpop.f32.mrb[0].mxu0 }
 0x18e   : > { %v478_v30 = vpop.f32.mrb[1].mxu0 }
 0x18f   : > { %v1000_v31 = vpack.c.bf16 %v925_v29, %v478_v30 }
 0x191   : > { %1001 = vmatprep.subr.bf16.mxu1 %v1000_v31 }
 0x192   : > { %1003 = vmatpush3.bf16.msra.mxu1 %v1000_v31 }
 0x195   : > { %931 = vmatmul.mubr.msk.f32.vlgmr.msra.gmra.mrb[0].mxu1 %vm500_vm0, %v490_v32 }
 0x268   : > { %v932_v34 = vpop.f32.mrb[0].mxu1 }
 0x269   : > { %v579_v35 = vadd.f32 %v932_v34, %v839_v33  ;;  %v573_v36 = vpop.f32.mrb[1].mxu1 }
 0x26a   : > { %v574_v38 = vadd.f32 %v839_v33, %v573_v36  ;;  %600 = sbr.rel (%p843_p3) target bundleno = 841 (0x349), region = 76 }
 0x26b   : > { %v583_v39 = vmax.f32 %v579_v35, 0.0 }
 0x26c   : > { %v582_v40 = vmax.f32 %v574_v38, 0.0 }
 0x26d   : > { %v592_v41 = vadd.f32 %v842_v37, %v583_v39 }
 0x26e   : > { %v591_v42 = vadd.f32 %v842_v37, %v582_v40 }
 0x26f   : > { %596 = vst [vmem:[#allocation2 + $0x8] sm:$0xff] %v592_v41 }
 0x270   : > { %595 = vst [vmem:[#allocation2] sm:$0xff] %v591_v42  ;;  %965 = vmatprep.mubr.f32.mxu0 (!%p843_p3), %v591_v42 }
 0x271   : > { %966 = vmatmul.mubr.f32.vlgmr.msra.gmra.mrb[0].mxu0 %v592_v41 }
 0x344   : > { %v967_v4 = vpop.f32.mrb[0].mxu0 }
 0x345   : > { %v696_v5 = vadd.f32 %v967_v4, %v844_v3  ;;  %v690_v6 = vpop.f32.mrb[1].mxu0 }
 0x346   : > { %v691_v7 = vadd.f32 %v844_v3, %v690_v6 }
 0x347   : > { %700 = vst [vmem:[#allocation11 + $0x8] sm:$0xff] %v696_v5 }
 0x348   : > { %699 = vst [vmem:[#allocation11] sm:$0xff] %v691_v7 }
 0x349 PF: > { %p1075_p12 = scmp.eq.s32.totalorder %s1419_s30, 1  ;;  %s1347_s9 = smov [#allocation11]  }
 0x34a   : > { %s710_s14 = sshll.u32 %s1347_s9, 4  ;;  %s711_s14 = int_to_ptr.vmem [resolvable:$true] %s710_s14 }
 0x34b   : > { %s1247_s15 = scalar_lea.vmem %s711_s14, 256  ;;  %p1254_p13 = scmp.lt.s32.totalorder %s711_s14, %s711_s14 }
 0x34c   : > { %p1248_p1 = scmp.ne.s32.totalorder %s711_s14, %s1247_s15  ;;  %p1255_p4 = scmp.lt.s32.totalorder %s1247_s15, %s1247_s15 }
 0x34e   : > { %p1249_p2 = pnand %p1248_p1, %p1075_p12  ;;  %p1256_p5 = por %p1255_p4, %p1254_p13 }
 0x350   : > { %p1250_p8 = pneg %p1249_p2 }
 0x352   : > { %p1257_p6 = pnand %p1256_p5, %p1250_p8 }
 0x354   : > { %1260 = shalt.err (!%p1257_p6)
}
 0x355   : > { %s1712_s16 = sld [smem:[#allocation20_spill]] }
 0x35b   : > { %s1261_s8 = scalar_lea.hbm %s1712_s16, 256 }
 0x35c   : > { %p1262_p7 = scmp.ne.s32.totalorder %s1712_s16, %s1261_s8  ;;  %p1267_p0 = scmp.lt.u32.totalorder %s1261_s8, %s1712_s16 }
 0x35e   : > { %p1263_p9 = pnand %p1262_p7, %p1075_p12 }
 0x360   : > { %p1264_p11 = pneg %p1263_p9 }
 0x362   : > { %p1269_p10 = pnand %p1267_p0, %p1264_p11 }
 0x364   : > { %1272 = shalt.err (!%p1269_p10)
}
 0x365   : > { %s1348_s7 = smov 128   ;;  %s1349_s19 = smov 8  }
 0x366   : > { %1051 = dma.vmem_to_hbm [thread:$0]  (%p1075_p12), %s711_s14, 256, %s1712_s16, [#allocation6], %s1348_s7, %s1348_s7, %s1349_s19  }
 0x367   : > { %1314 = dma.done.wait (%p1075_p12), [#allocation6], 256  }
 0x368   : > { %1316 = vsyncadd (%p1075_p12), [#allocation6], 4294967040 }
 0x369 PF: > { %s20_s29 = sadd.s32 1, %s1339_s29   ;;  %s1713_s24 = smov %s1323_s25 }
 0x36a   : > { %p17_p3 = scmp.ge.s32.totalorder %s20_s29, 4   ;;  %s1714_s25 = smov %s1327_s26 }
 0x36b   : > { %s1715_s26 = smov %s1537_s20  ;;  %s1716_s27 = smov %s1335_s28 }
 0x36c   : > { %s1717_s28 = smov %s1719_s11  ;;  %19 = sbr.rel (!%p17_p3) target bundleno = 10 (0xa), region = 117 }
 0x373   :  { %726 = vsyncpa [#allocation5], 1 }
 0x374   :  { %728 = vsyncpa [#allocation5 + $0x1], 1 }
 0x375   :  { %729 = vsyncpa [#allocation8], 1 }
 0x376   :  { %730 = vsyncpa [#allocation6], 1 }
 0x377   :  { %732 = vsyncpa [#allocation6 + $0x1], 1 }

</bundles_post_ra>
